<compile_context>
chip_gen: v7x
topology: tpu7x:2x2x1
jax: 0.10.0
libtpu: 0.0.40
codegen_flags: <defaults>
</compile_context>

<pallas_src>
import functools
import math

import jax
import jax.numpy as jnp
from jax.experimental import pallas as pl
from jax.experimental.pallas import tpu as pltpu


def _periodic_kernel(x_ref, coef_ref, bias_ref, out_ref, *, feat_cols, two_n):
    """One batch tile.

    x_ref:    (rows, K)  input features; K = G*F (G batch rows folded into lanes)
    coef_ref: (1, W)     2*pi*coef, duplicated [coef|coef] per feature, tiled G times
    bias_ref: (1, W)     [0..0 | pi/2..pi/2] per feature, tiled G times
    out_ref:  (rows, W)  lane-dense output slab, W = K*2N
    """
    x = x_ref[...]                              # (rows, K)
    rows = x.shape[0]
    # Expand x so that column c holds x[:, c // two_n]:
    # per-feature lane broadcast + a single lane concatenate (pure VPU/XLU,
    # exact f32 -- no MXU pass, no dot-precision dependence).
    pieces = [jnp.broadcast_to(x[:, k:k + 1], (rows, two_n))
              for k in range(feat_cols)]
    x_exp = pieces[0] if feat_cols == 1 else jnp.concatenate(pieces, axis=-1)
    # One full-width multiply + fused phase bias + one cos + one dense store.
    arg = x_exp * coef_ref[...] - bias_ref[...]
    out_ref[...] = jnp.cos(arg).astype(out_ref.dtype)


def prepare_periodic_params(coefficients: jax.Array):
    """One-time parameter transform (init-time, not per forward call).

    coefficients: (F, N) ->
      coef_flat: (1, F*2N) = flatten of 2*pi*[coef | coef]      (scale)
      bias_flat: (1, F*2N) = flatten of [0..0 | pi/2..pi/2]     (sin via cos(a-pi/2))
    """
    F, N = coefficients.shape
    coef_flat = ((2.0 * math.pi)
                 * jnp.concatenate([coefficients, coefficients], axis=-1)
                 ).astype(jnp.float32).reshape(1, F * 2 * N)
    bias_flat = jnp.concatenate(
        [jnp.zeros((F, N), jnp.float32),
         jnp.full((F, N), math.pi / 2.0, jnp.float32)],
        axis=-1,
    ).reshape(1, F * 2 * N)
    return coef_flat, bias_flat


def _round_up(v: int, m: int) -> int:
    return -(-v // m) * m


def _choose_group(batch: int, out_w: int, max_group: int = 64) -> int:
    """Smallest G with G*out_w % 128 == 0 (lane-dense output), if it divides B."""
    if out_w % 128 == 0:
        return 1
    g = 128 // math.gcd(out_w, 128)
    if g <= max_group and batch % g == 0:
        return g
    return 1


def _vmem_capacity_bytes() -> int:
    try:
        return int(pltpu.get_tpu_info().vmem_capacity_bytes)
    except Exception:
        return 64 * 1024 * 1024   # conservative fallback (v7x per-TensorCore VMEM)


def periodic_forward(
    x: jax.Array,
    coef_flat: jax.Array,
    bias_flat: jax.Array,
    *,
    out_dtype=None,
    block_rows: int | None = None,
) -> jax.Array:
    """Pallas implementation of Periodic.forward.

    x:         (B, F) float32
    coef_flat: (1, F*2N) float32   (from prepare_periodic_params)
    bias_flat: (1, F*2N) float32
    out_dtype: output storage dtype (default x.dtype; jnp.bfloat16 halves HBM
               writeback on v6e/v7x if downstream tolerates it).
    returns    (B, F, 2N), matching the PyTorch module output layout.
    """
    assert x.ndim == 2
    B, F = x.shape
    out_w = coef_flat.shape[-1]
    assert out_w % (2 * F) == 0 and bias_flat.shape == (1, out_w)
    two_n = out_w // F
    out_dtype = jnp.dtype(out_dtype if out_dtype is not None else x.dtype)

    # Fold G batch rows into lanes so the output slab width is 128-aligned.
    G = _choose_group(B, out_w)
    K, W, rows_total = G * F, G * out_w, B // G
    x2 = x.reshape(rows_total, K)                       # free row-major reshape
    coef_g = jnp.tile(coef_flat, (1, G)) if G > 1 else coef_flat
    bias_g = jnp.tile(bias_flat, (1, G)) if G > 1 else bias_flat

    # Generation-aware VMEM budget (96 MiB cap on 128 MiB parts, 48 MiB on v7x).
    vmem_limit = int(min(_vmem_capacity_bytes() * 3 // 4, 96 * 1024 * 1024))
    if block_rows is None:
        per_row = 2 * (K * x.dtype.itemsize + W * out_dtype.itemsize)  # dbl-buffered
        block_rows = max(8, ((vmem_limit // 2) // max(per_row, 1)) // 8 * 8)
    # Guarantee >=2 (>=4 for larger B) grid steps so v7x's 2 TCs both get work.
    if rows_total >= 32:
        block_rows = min(block_rows, _round_up(-(-rows_total // 4), 8))
    elif rows_total >= 16:
        block_rows = min(block_rows, _round_up(-(-rows_total // 2), 8))
    if block_rows >= rows_total:
        block_rows = rows_total                         # single full block (legal)
    grid = (pl.cdiv(rows_total, block_rows),)

    kernel = functools.partial(_periodic_kernel, feat_cols=K, two_n=two_n)
    out2d = pl.pallas_call(
        kernel,
        out_shape=jax.ShapeDtypeStruct((rows_total, W), out_dtype),
        grid=grid,
        in_specs=[
            pl.BlockSpec((block_rows, K), lambda i: (i, 0)),   # x: tiled over batch
            pl.BlockSpec((1, W), lambda i: (0, 0)),            # coef: resident
            pl.BlockSpec((1, W), lambda i: (0, 0)),            # bias: resident
        ],
        out_specs=pl.BlockSpec((block_rows, W), lambda i: (i, 0)),
        compiler_params=pltpu.CompilerParams(
            dimension_semantics=("parallel",),                 # megacore sharding on v7x
            vmem_limit_bytes=vmem_limit,
        ),
    )(x2, coef_g, bias_g)

    # Row-major (B/G, G*F*2N) -> (B, F, 2N) is a free metadata reshape.
    return out2d.reshape(B, F, two_n)


def make_log_linear_coefficients(n_features: int, n: int, sigma: float) -> jax.Array:
    # PeriodicOptions(initialization='log-linear'):
    #   coefficients = sigma ** (arange(n) / n), repeated over features.
    row = sigma ** (jnp.arange(n, dtype=jnp.float32) / n)
    return jnp.tile(row[None, :], (n_features, 1))  # (F, N)


def reference_forward(x: jax.Array, coefficients: jax.Array) -> jax.Array:
    # Pure-JAX transcription of the PyTorch forward:
    #   cos_sin(2*pi*coefficients[None] * x[..., None])
    arg = 2.0 * math.pi * coefficients[None] * x[..., None]
    return jnp.concatenate([jnp.cos(arg), jnp.sin(arg)], axis=-1)


if __name__ == "__main__":
    # Small shapes consistent with the module: batch=8, n_features=4, n=8.
    B, F, N = 8, 4, 8
    SIGMA = 0.1

    key = jax.random.PRNGKey(0)
    x = jax.random.normal(key, (B, F), dtype=jnp.float32)

    # Deterministic parameter init matching the 'log-linear' branch of __init__,
    # then the one-time transform (fold 2*pi, duplicate, build the phase bias).
    # TODO(synk): the 'normal' init branch and `trainable` flag are host-side
    # parameter setup, not kernel work.
    coefficients = make_log_linear_coefficients(F, N, SIGMA)
    coef_flat, bias_flat = prepare_periodic_params(coefficients)

    out = periodic_forward(x, coef_flat, bias_flat)
    out = jax.block_until_ready(out)

    # Correctness check against a pure-JAX reference of the PyTorch forward.
    ref = reference_forward(x, coefficients)
    assert out.shape == (B, F, 2 * N)
    assert jnp.allclose(out, ref, atol=1e-5, rtol=1e-5), float(jnp.max(jnp.abs(out - ref)))

    print("KERNEL_OK")
</pallas_src>

<mosaic_0001>
module attributes {stable_mosaic.version = 11 : i64} {
  func.func @_periodic_kernel(%arg0: i32, %arg1: memref<4x8xf32, #tpu.memory_space<vmem>>, %arg2: memref<1x128xf32, #tpu.memory_space<vmem>>, %arg3: memref<1x128xf32, #tpu.memory_space<vmem>>, %arg4: memref<4x128xf32, #tpu.memory_space<vmem>>) attributes {dimension_semantics = [#tpu.dimension_semantics<parallel>], iteration_bounds = array<i64: 1>, scalar_prefetch = 0 : i64, scratch_operands = 0 : i64, tpu.core_type = #tpu.core_type<tc>, window_params = [{transform_indices = @transform_0, window_bounds = array<i64: 4, 8>}, {pipeline_mode = #tpu.pipeline_mode<synchronous>, transform_indices = @transform_1, window_bounds = array<i64: 1, 128>}, {pipeline_mode = #tpu.pipeline_mode<synchronous>, transform_indices = @transform_2, window_bounds = array<i64: 1, 128>}, {transform_indices = @transform_3, window_bounds = array<i64: 4, 128>}]} {
    %c0 = arith.constant 0 : index
    %c0_0 = arith.constant 0 : index
    %0 = vector.load %arg1[%c0, %c0_0] : memref<4x8xf32, #tpu.memory_space<vmem>>, vector<4x8xf32>
    %1 = vector.extract_strided_slice %0 {offsets = [0, 0], sizes = [4, 1], strides = [1, 1]} : vector<4x8xf32> to vector<4x1xf32>
    %2 = vector.shape_cast %1 : vector<4x1xf32> to vector<4x1xf32>
    %3 = vector.broadcast %2 : vector<4x1xf32> to vector<4x16xf32>
    %4 = vector.extract_strided_slice %0 {offsets = [0, 1], sizes = [4, 1], strides = [1, 1]} : vector<4x8xf32> to vector<4x1xf32>
    %5 = vector.shape_cast %4 : vector<4x1xf32> to vector<4x1xf32>
    %6 = vector.broadcast %5 : vector<4x1xf32> to vector<4x16xf32>
    %7 = vector.extract_strided_slice %0 {offsets = [0, 2], sizes = [4, 1], strides = [1, 1]} : vector<4x8xf32> to vector<4x1xf32>
    %8 = vector.shape_cast %7 : vector<4x1xf32> to vector<4x1xf32>
    %9 = vector.broadcast %8 : vector<4x1xf32> to vector<4x16xf32>
    %10 = vector.extract_strided_slice %0 {offsets = [0, 3], sizes = [4, 1], strides = [1, 1]} : vector<4x8xf32> to vector<4x1xf32>
    %11 = vector.shape_cast %10 : vector<4x1xf32> to vector<4x1xf32>
    %12 = vector.broadcast %11 : vector<4x1xf32> to vector<4x16xf32>
    %13 = vector.extract_strided_slice %0 {offsets = [0, 4], sizes = [4, 1], strides = [1, 1]} : vector<4x8xf32> to vector<4x1xf32>
    %14 = vector.shape_cast %13 : vector<4x1xf32> to vector<4x1xf32>
    %15 = vector.broadcast %14 : vector<4x1xf32> to vector<4x16xf32>
    %16 = vector.extract_strided_slice %0 {offsets = [0, 5], sizes = [4, 1], strides = [1, 1]} : vector<4x8xf32> to vector<4x1xf32>
    %17 = vector.shape_cast %16 : vector<4x1xf32> to vector<4x1xf32>
    %18 = vector.broadcast %17 : vector<4x1xf32> to vector<4x16xf32>
    %19 = vector.extract_strided_slice %0 {offsets = [0, 6], sizes = [4, 1], strides = [1, 1]} : vector<4x8xf32> to vector<4x1xf32>
    %20 = vector.shape_cast %19 : vector<4x1xf32> to vector<4x1xf32>
    %21 = vector.broadcast %20 : vector<4x1xf32> to vector<4x16xf32>
    %22 = vector.extract_strided_slice %0 {offsets = [0, 7], sizes = [4, 1], strides = [1, 1]} : vector<4x8xf32> to vector<4x1xf32>
    %23 = vector.shape_cast %22 : vector<4x1xf32> to vector<4x1xf32>
    %24 = vector.broadcast %23 : vector<4x1xf32> to vector<4x16xf32>
    %25 = tpu.concatenate %3, %6, %9, %12, %15, %18, %21, %24 in 1 : vector<4x16xf32>, vector<4x16xf32>, vector<4x16xf32>, vector<4x16xf32>, vector<4x16xf32>, vector<4x16xf32>, vector<4x16xf32>, vector<4x16xf32> -> vector<4x128xf32>
    %c0_1 = arith.constant 0 : index
    %c0_2 = arith.constant 0 : index
    %26 = vector.load %arg2[%c0_1, %c0_2] : memref<1x128xf32, #tpu.memory_space<vmem>>, vector<1x128xf32>
    %27 = vector.broadcast %26 : vector<1x128xf32> to vector<4x128xf32>
    %28 = arith.mulf %25, %27 : vector<4x128xf32>
    %c0_3 = arith.constant 0 : index
    %c0_4 = arith.constant 0 : index
    %29 = vector.load %arg3[%c0_3, %c0_4] : memref<1x128xf32, #tpu.memory_space<vmem>>, vector<1x128xf32>
    %30 = vector.broadcast %29 : vector<1x128xf32> to vector<4x128xf32>
    %31 = arith.subf %28, %30 : vector<4x128xf32>
    %32 = math.cos %31 : vector<4x128xf32>
    %c0_5 = arith.constant 0 : index
    %c0_6 = arith.constant 0 : index
    %33 = vector.load %arg4[%c0_5, %c0_6] : memref<4x128xf32, #tpu.memory_space<vmem>>, vector<4x128xf32>
    tpu.vector_store %arg4[%c0_5, %c0_6], %32 {strides = array<i32>} : memref<4x128xf32, #tpu.memory_space<vmem>>, vector<4x128xf32>,
    return
  }
  func.func @transform_0(%arg0: i32) -> (i32, i32) {
    %c0_i32 = arith.constant 0 : i32
    %c0_i32_0 = arith.constant 0 : i32
    return %arg0, %c0_i32 : i32, i32
  }
  func.func @transform_1(%arg0: i32) -> (i32, i32) {
    %c0_i32 = arith.constant 0 : i32
    %c0_i32_0 = arith.constant 0 : i32
    %c0_i32_1 = arith.constant 0 : i32
    return %c0_i32, %c0_i32_0 : i32, i32
  }
  func.func @transform_2(%arg0: i32) -> (i32, i32) {
    %c0_i32 = arith.constant 0 : i32
    %c0_i32_0 = arith.constant 0 : i32
    %c0_i32_1 = arith.constant 0 : i32
    return %c0_i32, %c0_i32_0 : i32, i32
  }
  func.func @transform_3(%arg0: i32) -> (i32, i32) {
    %c0_i32 = arith.constant 0 : i32
    %c0_i32_0 = arith.constant 0 : i32
    return %arg0, %c0_i32 : i32, i32
  }
}

</mosaic_0001>

<bundles_post_ra>
// kernel: tpu_custom_call.1
= control target key start
LH: loop header
LB: loop body
LE: loop exit
PB: predicated region body
PF: predicated region fallthrough
CT: control target
= control target key end

     0   :  { %8 = vsyncpa [#allocation3], 0  ;;  %s384_s0 = inlined_call_operand.hbm [shape: f32[4,8], index: 0, kind: input, shape index: {}]   ;;  %s385_s1 = inlined_call_operand.vmem [shape: f32[1,128], index: 1, kind: input, shape index: {}]   ;;  %s386_s2 = inlined_call_operand.vmem [shape: f32[1,128], index: 2, kind: input, shape index: {}]   ;;  %s387_s3 = inlined_call_operand.hbm [shape: f32[4,128], index: 3, kind: output, shape index: {}]  }
   0x1   :  { %9 = vsyncpa [#allocation4], 0  ;;  %s297_s12 = smov [#allocation2]   ;;  %s249_s16 = scalar_lea.hbm %s384_s0, 64 }
   0x2   :  { %s16_s13 = sshll.u32 %s297_s12, 4  ;;  %p250_p0 = scmp.ne.s32.totalorder %s384_s0, %s249_s16  ;;  %s17_s13 = int_to_ptr.vmem [resolvable:$true] %s16_s13 }
   0x3   :  { %p253_p1 = scmp.lt.u32.totalorder %s249_s16, %s384_s0 }
   0x5   :  { %p255_p2 = pnand %p253_p1, %p250_p0 }
   0x7   :  { %258 = shalt.err (!%p255_p2)
}
   0x8   :  { %s259_s21 = scalar_lea.vmem %s17_s13, 64  ;;  %p264_p4 = scmp.lt.s32.totalorder %s17_s13, %s17_s13 }
   0x9   :  { %p260_p3 = scmp.ne.s32.totalorder %s17_s13, %s259_s21  ;;  %p265_p5 = scmp.lt.s32.totalorder %s259_s21, %s259_s21 }
   0xb   :  { %p266_p6 = por %p265_p5, %p264_p4 }
   0xd   :  { %p267_p7 = pnand %p266_p6, %p260_p3 }
   0xf   :  { %270 = shalt.err (!%p267_p7)
}
  0x10   :  { %19 = dma.hbm_to_vmem [thread:$0]  %s384_s0, 64, %s17_s13, [#allocation3]  }
  0x11   :  { %293 = dma.done.wait [#allocation3], 64  }
  0x12   :  { %294 = vsyncadd [#allocation3], 4294967232  ;;  %v298_v0 = vmov 2   ;;  %v299_v1 = vmov 0   ;;  %v27_v2 = vld [vmem:[#allocation2] sm:$0xf] }
  0x13   :  { %238 = vset.pattern.permute.xlu1 %v298_v0  ;;  %236 = vset.pattern.permute.xlu0 %v299_v1  ;;  %v300_v3 = vmov 3   ;;  %v301_v4 = vmov 1   ;;  %v302_v5 = vmov 4   ;;  %v303_v6 = vmov 5   ;;  %v210_v21 = vld [vmem:[%s385_s1] ss:$0 sm:$0xff] }
  0x14   :  { %38 = vperm.xlu1 %238, %v27_v2   ;;  %30 = vperm.xlu0 %236, %v27_v2   ;;  %v304_v7 = vmov 6   ;;  %v305_v8 = vmov 7   ;;  %vm61_vm0 = vcmask 130048   ;;  %vm63_vm1 = vcmask 261120   ;;  %v211_v24 = vld [vmem:[%s386_s2] ss:$0 sm:$0xff] }
  0x15   :  { %vm65_vm2 = vcmask 392192   ;;  %vm67_vm3 = vcmask 523264   ;;  %vm69_vm4 = vcmask 654336   ;;  %vm71_vm5 = vcmask 785408   ;;  %s312_s1 = smov [#allocation5]  }
  0x16   :  { %vm73_vm6 = vcmask 916480   ;;  %v306_v38 = vmov 683565275   ;;  %v307_v40 = vmov 2475754826   ;;  %s201_s2 = sshll.u32 %s312_s1, 4  ;;  %s202_s2 = int_to_ptr.vmem [resolvable:$true] %s201_s2 }
  0x17   :  { %v308_v43 = vmov 2131351028   ;;  %v309_v46 = vmov 2102212464   ;;  %v310_v49 = vmov 920167782   ;;  %p276_p9 = scmp.lt.s32.totalorder %s202_s2, %s202_s2 }
  0x18   :  { %239 = vset.pattern.permute.xlu1 %v300_v3  ;;  %237 = vset.pattern.permute.xlu0 %v301_v4  ;;  %v311_v52 = vmov 1326507024   ;;  %s271_s27 = scalar_lea.vmem %s202_s2, 64 }
  0x19   :  { %42 = vperm.xlu1 %239, %v27_v2   ;;  %34 = vperm.xlu0 %237, %v27_v2   ;;  %p272_p8 = scmp.ne.s32.totalorder %s202_s2, %s271_s27  ;;  %p277_p10 = scmp.lt.s32.totalorder %s271_s27, %s271_s27 }
  0x1b   :  { %p278_p11 = por %p277_p10, %p276_p9 }
  0x1d   :  { %240 = vset.pattern.permute.xlu1 %v302_v5  ;;  %241 = vset.pattern.permute.xlu0 %v303_v6  ;;  %p279_p12 = pnand %p278_p11, %p272_p8 }
  0x1e   :  { %46 = vperm.xlu1 %240, %v27_v2   ;;  %50 = vperm.xlu0 %241, %v27_v2  }
  0x22   :  { %242 = vset.pattern.permute.xlu1 %v304_v7  ;;  %244 = vset.pattern.permute.xlu0 %v305_v8 }
  0x23   :  { %54 = vperm.xlu1 %242, %v27_v2  }
  0x27   :  { %243 = vset.pattern.permute.xlu1 %v305_v8 }
  0x28   :  { %58 = vperm.xlu1 %243, %v27_v2  }
  0x93   :  { %v39_v9 = vpop.permute.xlu1 %38  ;;  %v31_v10 = vpop.permute.xlu0 %30 }
  0x98   :  { %v43_v11 = vpop.permute.xlu1 %42  ;;  %v35_v12 = vpop.permute.xlu0 %34 }
  0x99   :  { %v62_v13 = vsel %vm61_vm0, %v31_v10, %v35_v12 }
  0x9a   :  { %v64_v15 = vsel %vm63_vm1, %v62_v13, %v39_v9 }
  0x9b   :  { %v66_v16 = vsel %vm65_vm2, %v64_v15, %v43_v11 }
  0x9d   :  { %v47_v14 = vpop.permute.xlu1 %46  ;;  %v51_v19 = vpop.permute.xlu0 %50 }
  0x9e   :  { %v68_v18 = vsel %vm67_vm3, %v66_v16, %v47_v14 }
  0x9f   :  { %v70_v20 = vsel %vm69_vm4, %v68_v18, %v51_v19 }
  0xa2   :  { %v55_v17 = vpop.permute.xlu1 %54 }
  0xa3   :  { %v72_v22 = vsel %vm71_vm5, %v70_v20, %v55_v17 }
  0xa7   :  { %v59_v23 = vpop.permute.xlu1 %58 }
  0xa8   :  { %v74_v25 = vsel %vm73_vm6, %v72_v22, %v59_v23 }
  0xa9   :  { %v82_v26 = vmul.f32 %v210_v21, %v74_v25 }
  0xab   :  { %v351_v27 = vsub.f32 %v82_v26, %v211_v24 }
  0xad   :  { %v94_v28 = vand.u32 2139095040, %v351_v27  ;;  %v91_v32 = vand.u32 2147483647, %v351_v27  ;;  %vm93_vm14 = vcmp.lt.s32.totalorder %v351_v27, 0  ;;  %vm183_vm3 = vweird.f32 %v351_v27 }
  0xaf   :  { %v95_v29 = vshrl.u32 %v94_v28, 23  ;;  %v98_v36 = vand.u32 8388607, %v91_v32  ;;  %vm92_vm15 = vcmp.le.f32.partialorder %v91_v32, 0.7853982 }
  0xb1   :  { %v212_v30 = vadd.s32 4294967169, %v95_v29  ;;  %v99_v54 = vor.u32 8388608, %v98_v36 }
  0xb3   :  { %v101_v31 = vadd.s32 1, %v212_v30  ;;  %v139_v4 = vshll.u32 %v99_v54, 8 }
  0xb5   :  { %vm102_vm7 = vcmp.gt.s32.totalorder %v101_v31, 0 }
  0xb6   :  { %v103_v33 = vsel %vm102_vm7, %v101_v31, 0 }
  0xb7   :  { %v105_v34 = vand.u32 31, %v103_v33  ;;  %v104_v37 = vshrl.u32 %v103_v33, 5 }
  0xb9   :  { %v106_v35 = vsub.s32 32, %v105_v34  ;;  %v108_v39 = vshll.u32 %v306_v38, %v105_v34  ;;  %v111_v41 = vshll.u32 %v307_v40, %v105_v34  ;;  %v114_v45 = vshll.u32 %v308_v43, %v105_v34 }
  0xba   :  { %v117_v48 = vshll.u32 %v309_v46, %v105_v34  ;;  %v120_v51 = vshll.u32 %v310_v49, %v105_v34  ;;  %vm123_vm8 = vcmp.lt.s32.totalorder %v104_v37, 1  ;;  %vm126_vm9 = vcmp.lt.s32.totalorder %v104_v37, 4 }
  0xbb   :  { %v109_v42 = vshrl.u32 %v307_v40, %v106_v35  ;;  %v112_v44 = vshrl.u32 %v308_v43, %v106_v35  ;;  %v115_v47 = vshrl.u32 %v309_v46, %v106_v35  ;;  %v118_v50 = vshrl.u32 %v310_v49, %v106_v35 }
  0xbc   :  { %v121_v53 = vshrl.u32 %v311_v52, %v106_v35  ;;  %v107_v63 = vshrl.u32 %v306_v38, %v106_v35  ;;  %vm125_vm10 = vcmp.lt.s32.totalorder %v104_v37, 3  ;;  %vm124_vm11 = vcmp.lt.s32.totalorder %v104_v37, 2 }
  0xbd   :  { %v110_v55 = vor.u32 %v109_v42, %v108_v39  ;;  %v113_v56 = vor.u32 %v112_v44, %v111_v41  ;;  %v116_v57 = vor.u32 %v115_v47, %v114_v45  ;;  %v119_v58 = vor.u32 %v118_v50, %v117_v48 }
  0xbe   :  { %v122_v59 = vor.u32 %v121_v53, %v120_v51 }
  0xbf   :  { %v128_v60 = vsel %vm126_vm9, %v116_v57, 2102212464  ;;  %v131_v61 = vsel %vm123_vm8, %v110_v55, %v113_v56  ;;  %v135_v62 = vsel %vm123_vm8, %v113_v56, %v116_v57  ;;  %v132_v0 = vsel %vm126_vm9, %v119_v58, 920167782 }
  0xc0   :  { %v136_v1 = vsel %vm126_vm9, %v122_v59, 1326507024  ;;  %v133_v2 = vsel %vm125_vm10, %v116_v57, %v132_v0  ;;  %v127_v5 = vsel %vm123_vm8, %v107_v63, %v110_v55  ;;  %v129_v6 = vsel %vm125_vm10, %v113_v56, %v128_v60 }
  0xc1   :  { %v137_v3 = vsel %vm125_vm10, %v119_v58, %v136_v1  ;;  %v134_v7 = vsel %vm124_vm11, %v131_v61, %v133_v2  ;;  %v130_v13 = vsel %vm124_vm11, %v127_v5, %v129_v6 }
  0xc2   :  { %v138_v8 = vsel %vm124_vm11, %v135_v62, %v137_v3  ;;  %v360_v11 = vmul.u32.u64.low %v139_v4, %v134_v7  ;;  %v361_v12 = vmul.u32.u64.high %v139_v4, %v134_v7, %v360_v11  ;;  %v146_v15 = vmul.u32 %v139_v4, %v130_v13 }
  0xc3   :  { %v357_v9 = vmul.u32.u64.low %v139_v4, %v138_v8  ;;  %v358_v10 = vmul.u32.u64.high %v139_v4, %v138_v8, %v357_v9 }
  0xc4   :  { %v149_v14 = vadd.s32 1, %v361_v12 }
  0xc5   :  { %vm148_vm12 = vc.u32 %v358_v10, %v360_v11  ;;  %v147_v28 = vadd.s32 %v360_v11, %v358_v10 }
  0xc6   :  { %v150_v16 = vsel %vm148_vm12, %v149_v14, %v361_v12 }
  0xc7   :  { %v151_v17 = vadd.s32 %v150_v16, %v146_v15 }
  0xc9   :  { %v152_v18 = vadd.s32 536870912, %v151_v17 }
  0xcb   :  { %v153_v19 = vshrl.u32 %v152_v18, 30 }
  0xcd   :  { %v154_v20 = vshll.u32 %v153_v19, 30  ;;  %v177_v43 = vsub.s32 4, %v153_v19 }
  0xcf   :  { %v155_v21 = vsub.s32 %v151_v17, %v154_v20  ;;  %v178_v45 = vsel %vm93_vm14, %v177_v43, %v153_v19 }
  0xd0   :  { %v180_v46 = vsel %vm92_vm15, 0, %v178_v45 }
  0xd1   :  { %v157_v22 = vsub.s32 0, %v155_v21  ;;  %v184_v47 = vand.u32 3, %v180_v46 }
  0xd3   :  { %v213_v23 = vmin.u32 %v157_v22, %v155_v21  ;;  %vm189_vm0 = vcmp.eq.s32.totalorder %v184_v47, 2  ;;  %vm186_vm1 = vcmp.eq.s32.totalorder %v184_v47, 0  ;;  %vm185_vm2 = vcmp.lt.s32.totalorder %v184_v47, 2 }
  0xd5   :  { %v159_v24 = vclz %v213_v23 }
  0xd7   :  { %v214_v25 = vadd.s32 4294967294, %v159_v24 }
  0xd9   :  { %vm215_vm13 = vcmp.lt.s32.totalorder %v214_v25, 0 }
  0xda   :  { %v162_v26 = vsel %vm215_vm13, 0, %v214_v25 }
  0xdb   :  { %v163_v29 = vsub.s32 32, %v162_v26  ;;  %v167_v30 = vsub.s32 4294967266, %v162_v26  ;;  %v164_v31 = vshll.u32 %v155_v21, %v162_v26 }
  0xdd   :  { %v165_v33 = vshrl.u32 %v147_v28, %v163_v29  ;;  %v168_v34 = vadd.s32 127, %v167_v30 }
  0xdf   :  { %v166_v35 = vor.u32 %v165_v33, %v164_v31  ;;  %v169_v36 = vshll.u32 %v168_v34, 23 }
  0xe1   :  { %v170_v37 = vor.u32 4788187, %v169_v36  ;;  %v173_v39 = vcvt.s32.f32 %v166_v35 }
  0xe3   :  { %v171_v38 = vand.u32 2147483647, %v170_v37 }
  0xe5   :  { %v174_v40 = vmul.f32 %v173_v39, %v171_v38 }
  0xe7   :  { %v175_v41 = vxor.u32 2147483648, %v174_v40 }
  0xe9   :  { %v176_v42 = vsel %vm93_vm14, %v175_v41, %v174_v40 }
  0xea   :  { %v179_v44 = vsel %vm92_vm15, %v351_v27, %v176_v42 }
  0xeb   :  { %245 = vcosq.f32 %v179_v44 }
  0xec   :  { %247 = vsinq.f32 %v179_v44 }
  0xf5   :  { %v246_v48 = vpop.eup %245 }
  0xf6   :  { %v248_v49 = vpop.eup %247  ;;  %v190_v50 = vxor.u32 2147483648, %v246_v48 }
  0xf7   :  { %v187_v51 = vxor.u32 2147483648, %v248_v49 }
  0xf8   :  { %v191_v52 = vsel %vm189_vm0, %v190_v50, %v248_v49 }
  0xf9   :  { %v188_v32 = vsel %vm186_vm1, %v246_v48, %v187_v51 }
  0xfa   :  { %v192_v53 = vsel %vm185_vm2, %v188_v32, %v191_v52 }
  0xfb   :  { %v193_v54 = vsel %vm183_vm3, nan, %v192_v53 }
  0xfc   :  { %194 = vst [vmem:[#allocation5] sm:$0xf] %v193_v54 }
  0xfd   :  { %282 = shalt.err (!%p279_p12)
}
  0xfe   :  { %s283_s30 = scalar_lea.hbm %s387_s3, 64 }
  0xff   :  { %p284_p13 = scmp.ne.s32.totalorder %s387_s3, %s283_s30  ;;  %p287_p0 = scmp.lt.u32.totalorder %s283_s30, %s387_s3 }
 0x101   :  { %p289_p1 = pnand %p287_p0, %p284_p13 }
 0x103   :  { %292 = shalt.err (!%p289_p1)
}
 0x104   :  { %204 = dma.vmem_to_hbm [thread:$0]  %s202_s2, 64, %s387_s3, [#allocation4]  }
 0x105   :  { %295 = dma.done.wait [#allocation4], 64  }
 0x106   :  { %296 = vsyncadd [#allocation4], 4294967232 }
 0x107   :  { %208 = vsyncpa [#allocation3], 1 }
 0x108   :  { %209 = vsyncpa [#allocation4], 1 }

</bundles_post_ra>
